<compile_context>
chip_gen: v5e
topology: v5e:2x2
jax: 0.10.0
libtpu: 0.0.40
codegen_flags: <defaults>
</compile_context>

<pallas_src>
import math

import jax
import jax.numpy as jnp
from jax.experimental import pallas as pl
from jax.experimental.pallas import tpu as pltpu


_MAX_CHUNKS = 8                       # up to 8 parallel DMAs for big tensors
_CHUNK_MIN_BYTES = 8 * 1024 * 1024    # only chunk arrays >= 8 MiB


def _chunk_plan(shape, dtype):
    """Static (start, size) leading-dim chunks for one tensor.

    Single whole-ref copy unless the tensor is large (>= 8 MiB) and has
    ndim >= 3 (so the leading dim is outside the tiled last-two dims and a
    leading-dim slice is a contiguous, layout-preserving region).
    """
    n = math.prod(shape) if shape else 1
    nbytes = n * jnp.dtype(dtype).itemsize
    if len(shape) < 3 or nbytes < _CHUNK_MIN_BYTES or shape[0] < 2:
        return ((0, shape[0] if shape else 1),)
    k = min(_MAX_CHUNKS, shape[0])
    base, rem = divmod(shape[0], k)
    bounds, start = [], 0
    for i in range(k):
        size = base + (1 if i < rem else 0)
        bounds.append((start, size))
        start += size
    return tuple(bounds)


def _build_copy_fn(sig):
    """Build a jitted batched HBM->HBM DMA copy for a (shape, dtype) signature."""
    shapes = [s for s, _ in sig]
    dtypes = [d for _, d in sig]
    plans = [_chunk_plan(s, d) for s, d in zip(shapes, dtypes)]
    n = len(sig)
    total_sems = sum(len(p) for p in plans)

    def kernel(*refs):
        in_refs = refs[:n]
        out_refs = refs[n:2 * n]
        sems = refs[2 * n]
        copies = []
        sem_idx = 0
        for t in range(n):
            plan = plans[t]
            if len(plan) == 1:
                # Whole-ref copy: one DMA descriptor, no slicing.
                cp = pltpu.make_async_copy(in_refs[t], out_refs[t],
                                           sems.at[sem_idx])
                cp.start()
                copies.append(cp)
                sem_idx += 1
            else:
                # Chunked along the (untiled) leading dim -> parallel DMAs.
                for (start, size) in plan:
                    cp = pltpu.make_async_copy(
                        in_refs[t].at[pl.ds(start, size)],
                        out_refs[t].at[pl.ds(start, size)],
                        sems.at[sem_idx])
                    cp.start()
                    copies.append(cp)
                    sem_idx += 1
        for cp in copies:
            cp.wait()

    call = pl.pallas_call(
        kernel,
        out_shape=tuple(jax.ShapeDtypeStruct(s, d) for s, d in zip(shapes, dtypes)),
        in_specs=[pl.BlockSpec(memory_space=pl.ANY) for _ in range(n)],
        out_specs=tuple(pl.BlockSpec(memory_space=pl.ANY) for _ in range(n)),
        scratch_shapes=[pltpu.SemaphoreType.DMA((total_sems,))],
    )
    return jax.jit(call)


class ToDevice:
    """JAX/Pallas equivalent of the PyTorch ToDevice module.

    On a single JAX device this module is semantically a no-op; the Pallas
    kernel performs an explicit HBM->HBM DMA copy for parity with `.to(device)`
    materializing a fresh buffer.
    """

    def __init__(self):
        # Deterministic buffer matching register_buffer('buf', zeros(1, float32)).
        self.buf = jnp.zeros((1,), dtype=jnp.float32)
        self._cache = {}  # (shapes, dtypes) signature -> jitted copy callable

    def __call__(self, *xs):
        if len(xs) == 1 and isinstance(xs[0], (tuple, list)):
            xs = tuple(xs[0])

        # Tensors that go through the batched DMA kernel: non-None, >=1-D,
        # non-empty. 0-d scalars / empty arrays pass through unchanged
        # (identical to .to() on a tensor already on the target device).
        idxs, arrs = [], []
        for i, x in enumerate(xs):
            if x is not None and getattr(x, "ndim", 0) >= 1 and x.size > 0:
                idxs.append(i)
                arrs.append(x)

        out = list(xs)
        if arrs:
            sig = tuple((tuple(a.shape), a.dtype) for a in arrs)
            fn = self._cache.get(sig)
            if fn is None:
                fn = _build_copy_fn(sig)
                self._cache[sig] = fn
            copies = fn(*arrs)
            if not isinstance(copies, (tuple, list)):
                copies = (copies,)
            for i, c in zip(idxs, copies):
                out[i] = c
        return out[0] if len(xs) == 1 else tuple(out)


if __name__ == "__main__":
    key = jax.random.PRNGKey(0)
    k1, k2, k3 = jax.random.split(key, 3)

    # Small NCHW-like input plus extra tensors exercising tuple, narrow-dtype
    # and non-tile-aligned shapes.
    x = jax.random.normal(k1, (2, 4, 16, 16), dtype=jnp.float32)
    y = jax.random.normal(k2, (8, 32), dtype=jnp.bfloat16)
    z = jax.random.normal(k3, (3, 5), dtype=jnp.float32)  # not a multiple of 128

    mod = ToDevice()

    # Single-input path: returns a single tensor.
    out_single = jax.block_until_ready(mod(x))
    assert out_single.shape == x.shape and out_single.dtype == x.dtype
    assert bool(jnp.all(out_single == x))

    # Multi-input path: returns a tuple (including None passthrough); all
    # three tensors are copied by ONE batched pallas_call.
    ox, oy, oz, on = mod(x, y, z, None)
    ox, oy, oz = jax.block_until_ready((ox, oy, oz))
    assert on is None
    assert ox.shape == x.shape and ox.dtype == x.dtype and bool(jnp.all(ox == x))
    assert oy.shape == y.shape and oy.dtype == y.dtype and bool(jnp.all(oy == y))
    assert oz.shape == z.shape and oz.dtype == z.dtype and bool(jnp.all(oz == z))

    # Tuple-as-single-argument path (list unpacking), as in the PyTorch module.
    o2x, o2y = mod((x, y))
    o2x, o2y = jax.block_until_ready((o2x, o2y))
    assert bool(jnp.all(o2x == x)) and bool(jnp.all(o2y == y))

    print("KERNEL_OK")
</pallas_src>

<mosaic_0001>
module attributes {stable_mosaic.version = 11 : i64} {
  func.func @kernel(%arg0: memref<2x4x16x16xf32, #tpu.memory_space<any>>, %arg1: memref<2x4x16x16xf32, #tpu.memory_space<any>>, %arg2: memref<1x!tpu.dma_semaphore, #tpu.memory_space<semaphore_mem>>) attributes {dimension_semantics = [], scalar_prefetch = 0 : i64, scratch_operands = 1 : i64, tpu.core_type = #tpu.core_type<tc>} {
    %c0_i32 = arith.constant 0 : i32
    %0 = tpu.memref_slice %arg2[%c0_i32] : memref<1x!tpu.dma_semaphore, #tpu.memory_space<semaphore_mem>> -> memref<1x!tpu.dma_semaphore, #tpu.memory_space<semaphore_mem>>
    %1 = tpu.memref_squeeze %0 : memref<1x!tpu.dma_semaphore, #tpu.memory_space<semaphore_mem>> -> memref<!tpu.dma_semaphore, #tpu.memory_space<semaphore_mem>>
    tpu.enqueue_dma source(%arg0 : memref<2x4x16x16xf32, #tpu.memory_space<any>>) target(%arg1 : memref<2x4x16x16xf32, #tpu.memory_space<any>>) target_semaphore(%1 : memref<!tpu.dma_semaphore, #tpu.memory_space<semaphore_mem>>)
    %c0_i32_0 = arith.constant 0 : i32
    %2 = tpu.memref_slice %arg2[%c0_i32_0] : memref<1x!tpu.dma_semaphore, #tpu.memory_space<semaphore_mem>> -> memref<1x!tpu.dma_semaphore, #tpu.memory_space<semaphore_mem>>
    %3 = tpu.memref_squeeze %2 : memref<1x!tpu.dma_semaphore, #tpu.memory_space<semaphore_mem>> -> memref<!tpu.dma_semaphore, #tpu.memory_space<semaphore_mem>>
    tpu.wait_dma2 semaphore(%3 : memref<!tpu.dma_semaphore, #tpu.memory_space<semaphore_mem>>) src(%arg0 : memref<2x4x16x16xf32, #tpu.memory_space<any>>) dst(%arg1 : memref<2x4x16x16xf32, #tpu.memory_space<any>>)
    return
  }
}

</mosaic_0001>

<bundles_post_ra>
// kernel: tpu_custom_call.1
= control target key start
LH: loop header
LB: loop body
LE: loop exit
PB: predicated region body
PF: predicated region fallthrough
CT: control target
= control target key end

     0   :  { %s34_s12 = smov [#allocation2]   ;;  %s35_s13 = smov [#allocation3]   ;;  %s53_s0 = inlined_call_operand.hbm [shape: f32[2,4,16,16], index: 0, kind: input, shape index: {}]   ;;  %s54_s1 = inlined_call_operand.hbm [shape: f32[2,4,16,16], index: 1, kind: output, shape index: {}]  }
   0x1   :  { %s10_s8 = sshll.u32 %s53_s0, 4  ;;  %s12_s11 = sshll.u32 %s54_s1, 4  ;;  %s11_s8 = int_to_ptr.hbm [resolvable:$true] %s10_s8  ;;  %s13_s11 = int_to_ptr.hbm [resolvable:$true] %s12_s11 }
   0x2   :  { %s36_s14 = smov 0  }
   0x3   :  { %16 = dma.general %s11_s8, 2048, %s13_s11, %s34_s12, %s35_s13, [#allocation4], %s36_s14, 0  }
   0x4   :  { %32 = dma.done.wait [#allocation2], 2048 }
   0x5   :  { %33 = vsyncadd [#allocation2], 4294965248 }
   0x6   :  { %22 = vsyncmov [#allocation2] }
   0x9   :  { %s23_s15 = vpop.sfrf %22 }
   0xa   :  { %p28_p0 = scmp.ne.s32.totalorder %s23_s15, 0 }
   0xc   :  { %27 = shalt.err (%p28_p0)  }

</bundles_post_ra>
